<compile_context>
chip_gen: v7x
topology: tpu7x:2x2x1
jax: 0.10.0
libtpu: 0.0.40
codegen_flags: <defaults>
</compile_context>

<pallas_src>
import jax
import jax.numpy as jnp
from jax.experimental import pallas as pl
from jax.experimental.pallas import tpu as pltpu

INPUT_DIM = 310
H1, H2, H3 = 128, 64, 32
NUM_CLASSES = 3
NEG_SLOPE = 0.01

OUT_PAD = 8                    # 3 -> 8 output lanes (full-dim last block; tiny writeback)
TM_MAX = 2048                  # batch-tile cap; ~8 MiB working set, safe on all chips
COMPUTE_DTYPE = jnp.bfloat16   # MXU-input dtype; accumulation stays f32


def _leaky_relu(x):
    return jnp.where(x > 0, x, NEG_SLOPE * x)


def _round_up(n, m):
    return ((n + m - 1) // m) * m


def _choose_tm(batch):
    if batch <= 512:
        # One tile; round only to sublane granularity (8 rows).
        return max(8, _round_up(batch, 8))
    # Large batch: >= 2 tiles so both v7x TensorCores get work; 256-row
    # granularity feeds the 256-wide v6e/v7x MXU; cap for VMEM.
    return min(TM_MAX, _round_up(pl.cdiv(batch, 2), 256))


def mlp_kernel(x_ref,
               w1_ref, b1_ref,
               w2_ref, b2_ref,
               w3_ref, b3_ref,
               w4_ref, b4_ref,
               o_ref):
    # In-kernel f32 -> bf16 cast; layer-1 dot contracts over K = 310 directly
    # (Mosaic handles the non-128-multiple contraction dim).
    x = x_ref[...].astype(COMPUTE_DTYPE)

    h = jnp.dot(x, w1_ref[...], preferred_element_type=jnp.float32) + b1_ref[...]
    h = _leaky_relu(h)
    # dropout(p=0.2): identity at inference

    h = jnp.dot(h.astype(COMPUTE_DTYPE), w2_ref[...],
                preferred_element_type=jnp.float32) + b2_ref[...]
    h = _leaky_relu(h)
    # dropout(p=0.2): identity at inference

    h = jnp.dot(h.astype(COMPUTE_DTYPE), w3_ref[...],
                preferred_element_type=jnp.float32) + b3_ref[...]
    h = _leaky_relu(h)

    # Final linear ("softmax" layer in the PyTorch module is just a Linear;
    # no softmax activation is applied). Output columns 3..7 are zero padding.
    out = jnp.dot(h.astype(COMPUTE_DTYPE), w4_ref[...],
                  preferred_element_type=jnp.float32) + b4_ref[...]
    o_ref[...] = out.astype(o_ref.dtype)


def init_params(key):
    """PyTorch-Linear-style init: U(-1/sqrt(fan_in), 1/sqrt(fan_in)).
    Weights stored (in_features, out_features) f32; biases (1, out) f32."""
    dims = [(INPUT_DIM, H1), (H1, H2), (H2, H3), (H3, NUM_CLASSES)]
    params = []
    for i, (fan_in, fan_out) in enumerate(dims):
        kw, kb = jax.random.split(jax.random.fold_in(key, i))
        bound = 1.0 / (fan_in ** 0.5)
        w = jax.random.uniform(kw, (fan_in, fan_out), jnp.float32, -bound, bound)
        b = jax.random.uniform(kb, (1, fan_out), jnp.float32, -bound, bound)
        params.extend([w, b])
    return tuple(params)


def prepare_params(params, compute_dtype=COMPUTE_DTYPE):
    """Cast weights to the compute dtype (w1 stays K=310 — no input-side K pad);
    pad only the final layer's output dim 3 -> 8. Biases stay f32."""
    w1, b1, w2, b2, w3, b3, w4, b4 = params
    w4p = jnp.zeros((H3, OUT_PAD), compute_dtype).at[:, :NUM_CLASSES].set(
        w4.astype(compute_dtype))
    b4p = jnp.zeros((1, OUT_PAD), jnp.float32).at[:, :NUM_CLASSES].set(
        b4.astype(jnp.float32))
    return (w1.astype(compute_dtype), b1.astype(jnp.float32),
            w2.astype(compute_dtype), b2.astype(jnp.float32),
            w3.astype(compute_dtype), b3.astype(jnp.float32),
            w4p, b4p)


@jax.jit
def baseline_mlp_forward(x, kernel_params):
    """x: (B, ...) flattened to (B, 310) f32. Returns (B, NUM_CLASSES) f32."""
    B = x.shape[0]
    x2d = x.reshape(B, -1)
    assert x2d.shape[1] == INPUT_DIM, f"expected flattened dim {INPUT_DIM}"

    tm = _choose_tm(B)
    grid = (pl.cdiv(B, tm),)   # ragged last tile allowed; OOB writes masked

    (w1, b1, w2, b2, w3, b3, w4, b4) = kernel_params

    def tile_spec(shape):        # batch-tiled arrays
        return pl.BlockSpec(shape, lambda i: (i, 0))

    def resident_spec(shape):    # weights/biases: constant block -> VMEM-resident
        return pl.BlockSpec(shape, lambda i: (0, 0))

    weight_bytes = sum(int(a.size) * a.dtype.itemsize
                       for a in (w1, b1, w2, b2, w3, b3, w4, b4))
    flops = 2 * B * (INPUT_DIM * H1 + H1 * H2 + H2 * H3 + H3 * OUT_PAD)
    bytes_accessed = B * INPUT_DIM * 4 + weight_bytes + B * OUT_PAD * 4
    cost = pl.CostEstimate(flops=flops, transcendentals=0,
                           bytes_accessed=bytes_accessed)

    out_pad = pl.pallas_call(
        mlp_kernel,
        out_shape=jax.ShapeDtypeStruct((B, OUT_PAD), jnp.float32),
        grid=grid,
        in_specs=[
            tile_spec((tm, INPUT_DIM)),                       # x, unpadded
            resident_spec((INPUT_DIM, H1)), resident_spec((1, H1)),
            resident_spec((H1, H2)),        resident_spec((1, H2)),
            resident_spec((H2, H3)),        resident_spec((1, H3)),
            resident_spec((H3, OUT_PAD)),   resident_spec((1, OUT_PAD)),
        ],
        out_specs=tile_spec((tm, OUT_PAD)),
        compiler_params=pltpu.CompilerParams(
            dimension_semantics=("parallel",),
            vmem_limit_bytes=32 * 1024 * 1024),
        cost_estimate=cost,
    )(x2d, w1, b1, w2, b2, w3, b3, w4, b4)

    return out_pad[:, :NUM_CLASSES]


def reference_forward(x, params, compute_dtype=COMPUTE_DTYPE):
    """Pure-JAX reference matching the kernel's mixed-precision scheme."""
    w1, b1, w2, b2, w3, b3, w4, b4 = params

    def lin(h, w, b):
        hb = h.astype(compute_dtype).astype(jnp.float32)
        wb = w.astype(compute_dtype).astype(jnp.float32)
        return hb @ wb + b

    h = x.reshape(x.shape[0], -1)
    h = _leaky_relu(lin(h, w1, b1))
    h = _leaky_relu(lin(h, w2, b2))
    h = _leaky_relu(lin(h, w3, b3))
    return lin(h, w4, b4)


if __name__ == "__main__":
    key = jax.random.PRNGKey(0)
    k_x, k_p = jax.random.split(key)

    params = init_params(k_p)
    kernel_params = prepare_params(params)

    # Small deterministic example (batch=2, 310 features).
    B = 2
    x = jax.random.normal(k_x, (B, INPUT_DIM), dtype=jnp.float32)
    out = jax.block_until_ready(baseline_mlp_forward(x, kernel_params))
    assert out.shape == (B, NUM_CLASSES), out.shape
    ref = reference_forward(x, params)
    assert jnp.allclose(out, ref, atol=5e-2, rtol=5e-2), (out, ref)

    # Non-multiple-of-8 batch exercises the ragged last tile / masked writeback.
    B2 = 300
    x2 = jax.random.normal(jax.random.fold_in(k_x, 1), (B2, INPUT_DIM),
                           dtype=jnp.float32)
    out2 = jax.block_until_ready(baseline_mlp_forward(x2, kernel_params))
    ref2 = reference_forward(x2, params)
    assert out2.shape == (B2, NUM_CLASSES), out2.shape
    assert jnp.allclose(out2, ref2, atol=5e-2, rtol=5e-2)

    print("KERNEL_OK")
</pallas_src>

<mosaic_0001>
module attributes {stable_mosaic.version = 11 : i64} {
  func.func @mlp_kernel(%arg0: i32, %arg1: memref<8x310xf32, #tpu.memory_space<vmem>>, %arg2: memref<310x128xbf16, #tpu.memory_space<vmem>>, %arg3: memref<1x128xf32, #tpu.memory_space<vmem>>, %arg4: memref<128x64xbf16, #tpu.memory_space<vmem>>, %arg5: memref<1x64xf32, #tpu.memory_space<vmem>>, %arg6: memref<64x32xbf16, #tpu.memory_space<vmem>>, %arg7: memref<1x32xf32, #tpu.memory_space<vmem>>, %arg8: memref<32x8xbf16, #tpu.memory_space<vmem>>, %arg9: memref<1x8xf32, #tpu.memory_space<vmem>>, %arg10: memref<8x8xf32, #tpu.memory_space<vmem>>) attributes {dimension_semantics = [#tpu.dimension_semantics<parallel>], iteration_bounds = array<i64: 1>, scalar_prefetch = 0 : i64, scratch_operands = 0 : i64, tpu.core_type = #tpu.core_type<tc>, window_params = [{transform_indices = @transform_0, window_bounds = array<i64: 8, 310>}, {pipeline_mode = #tpu.pipeline_mode<synchronous>, transform_indices = @transform_1, window_bounds = array<i64: 310, 128>}, {pipeline_mode = #tpu.pipeline_mode<synchronous>, transform_indices = @transform_2, window_bounds = array<i64: 1, 128>}, {pipeline_mode = #tpu.pipeline_mode<synchronous>, transform_indices = @transform_3, window_bounds = array<i64: 128, 64>}, {pipeline_mode = #tpu.pipeline_mode<synchronous>, transform_indices = @transform_4, window_bounds = array<i64: 1, 64>}, {pipeline_mode = #tpu.pipeline_mode<synchronous>, transform_indices = @transform_5, window_bounds = array<i64: 64, 32>}, {pipeline_mode = #tpu.pipeline_mode<synchronous>, transform_indices = @transform_6, window_bounds = array<i64: 1, 32>}, {pipeline_mode = #tpu.pipeline_mode<synchronous>, transform_indices = @transform_7, window_bounds = array<i64: 32, 8>}, {pipeline_mode = #tpu.pipeline_mode<synchronous>, transform_indices = @transform_8, window_bounds = array<i64: 1, 8>}, {transform_indices = @transform_9, window_bounds = array<i64: 8, 8>}]} {
    %c0 = arith.constant 0 : index
    %c0_0 = arith.constant 0 : index
    %0 = vector.load %arg1[%c0, %c0_0] : memref<8x310xf32, #tpu.memory_space<vmem>>, vector<8x310xf32>
    %1 = arith.truncf %0 : vector<8x310xf32> to vector<8x310xbf16>
    %c0_1 = arith.constant 0 : index
    %c0_2 = arith.constant 0 : index
    %2 = vector.load %arg2[%c0_1, %c0_2] : memref<310x128xbf16, #tpu.memory_space<vmem>>, vector<310x128xbf16>
    %cst = arith.constant dense<0.000000e+00> : vector<8x128xf32>
    %3 = tpu.matmul %1, %2, %cst {dimension_numbers = #tpu.dot_dimension_numbers<[1], [0], [0], [1], [0, 0, 1, 1], [], []>} : vector<8x310xbf16>, vector<310x128xbf16>, vector<8x128xf32> -> vector<8x128xf32>
    %c0_3 = arith.constant 0 : index
    %c0_4 = arith.constant 0 : index
    %4 = vector.load %arg3[%c0_3, %c0_4] : memref<1x128xf32, #tpu.memory_space<vmem>>, vector<1x128xf32>
    %5 = vector.broadcast %4 : vector<1x128xf32> to vector<8x128xf32>
    %6 = arith.addf %3, %5 : vector<8x128xf32>
    %cst_5 = arith.constant 0.000000e+00 : f32
    %7 = vector.broadcast %cst_5 : f32 to vector<8x128xf32>
    %8 = arith.cmpf ogt, %6, %7 : vector<8x128xf32>
    %cst_6 = arith.constant 0.00999999977 : f32
    %9 = vector.broadcast %cst_6 : f32 to vector<8x128xf32>
    %10 = arith.mulf %9, %6 : vector<8x128xf32>
    %11 = arith.select %8, %6, %10 : vector<8x128xi1>, vector<8x128xf32>
    %12 = arith.truncf %11 : vector<8x128xf32> to vector<8x128xbf16>
    %c0_7 = arith.constant 0 : index
    %c0_8 = arith.constant 0 : index
    %13 = vector.load %arg4[%c0_7, %c0_8] : memref<128x64xbf16, #tpu.memory_space<vmem>>, vector<128x64xbf16>
    %cst_9 = arith.constant dense<0.000000e+00> : vector<8x64xf32>
    %14 = tpu.matmul %12, %13, %cst_9 {dimension_numbers = #tpu.dot_dimension_numbers<[1], [0], [0], [1], [0, 0, 1, 1], [], []>} : vector<8x128xbf16>, vector<128x64xbf16>, vector<8x64xf32> -> vector<8x64xf32>
    %c0_10 = arith.constant 0 : index
    %c0_11 = arith.constant 0 : index
    %15 = vector.load %arg5[%c0_10, %c0_11] : memref<1x64xf32, #tpu.memory_space<vmem>>, vector<1x64xf32>
    %16 = vector.broadcast %15 : vector<1x64xf32> to vector<8x64xf32>
    %17 = arith.addf %14, %16 : vector<8x64xf32>
    %cst_12 = arith.constant 0.000000e+00 : f32
    %18 = vector.broadcast %cst_12 : f32 to vector<8x64xf32>
    %19 = arith.cmpf ogt, %17, %18 : vector<8x64xf32>
    %cst_13 = arith.constant 0.00999999977 : f32
    %20 = vector.broadcast %cst_13 : f32 to vector<8x64xf32>
    %21 = arith.mulf %20, %17 : vector<8x64xf32>
    %22 = arith.select %19, %17, %21 : vector<8x64xi1>, vector<8x64xf32>
    %23 = arith.truncf %22 : vector<8x64xf32> to vector<8x64xbf16>
    %c0_14 = arith.constant 0 : index
    %c0_15 = arith.constant 0 : index
    %24 = vector.load %arg6[%c0_14, %c0_15] : memref<64x32xbf16, #tpu.memory_space<vmem>>, vector<64x32xbf16>
    %cst_16 = arith.constant dense<0.000000e+00> : vector<8x32xf32>
    %25 = tpu.matmul %23, %24, %cst_16 {dimension_numbers = #tpu.dot_dimension_numbers<[1], [0], [0], [1], [0, 0, 1, 1], [], []>} : vector<8x64xbf16>, vector<64x32xbf16>, vector<8x32xf32> -> vector<8x32xf32>
    %c0_17 = arith.constant 0 : index
    %c0_18 = arith.constant 0 : index
    %26 = vector.load %arg7[%c0_17, %c0_18] : memref<1x32xf32, #tpu.memory_space<vmem>>, vector<1x32xf32>
    %27 = vector.broadcast %26 : vector<1x32xf32> to vector<8x32xf32>
    %28 = arith.addf %25, %27 : vector<8x32xf32>
    %cst_19 = arith.constant 0.000000e+00 : f32
    %29 = vector.broadcast %cst_19 : f32 to vector<8x32xf32>
    %30 = arith.cmpf ogt, %28, %29 : vector<8x32xf32>
    %cst_20 = arith.constant 0.00999999977 : f32
    %31 = vector.broadcast %cst_20 : f32 to vector<8x32xf32>
    %32 = arith.mulf %31, %28 : vector<8x32xf32>
    %33 = arith.select %30, %28, %32 : vector<8x32xi1>, vector<8x32xf32>
    %34 = arith.truncf %33 : vector<8x32xf32> to vector<8x32xbf16>
    %c0_21 = arith.constant 0 : index
    %c0_22 = arith.constant 0 : index
    %35 = vector.load %arg8[%c0_21, %c0_22] : memref<32x8xbf16, #tpu.memory_space<vmem>>, vector<32x8xbf16>
    %cst_23 = arith.constant dense<0.000000e+00> : vector<8x8xf32>
    %36 = tpu.matmul %34, %35, %cst_23 {dimension_numbers = #tpu.dot_dimension_numbers<[1], [0], [0], [1], [0, 0, 1, 1], [], []>} : vector<8x32xbf16>, vector<32x8xbf16>, vector<8x8xf32> -> vector<8x8xf32>
    %c0_24 = arith.constant 0 : index
    %c0_25 = arith.constant 0 : index
    %37 = vector.load %arg9[%c0_24, %c0_25] : memref<1x8xf32, #tpu.memory_space<vmem>>, vector<1x8xf32>
    %38 = vector.broadcast %37 : vector<1x8xf32> to vector<8x8xf32>
    %39 = arith.addf %36, %38 : vector<8x8xf32>
    %c0_26 = arith.constant 0 : index
    %c0_27 = arith.constant 0 : index
    %40 = vector.load %arg10[%c0_26, %c0_27] : memref<8x8xf32, #tpu.memory_space<vmem>>, vector<8x8xf32>
    tpu.vector_store %arg10[%c0_26, %c0_27], %39 {strides = array<i32>} : memref<8x8xf32, #tpu.memory_space<vmem>>, vector<8x8xf32>,
    return
  }
  func.func @transform_0(%arg0: i32) -> (i32, i32) {
    %c0_i32 = arith.constant 0 : i32
    %c0_i32_0 = arith.constant 0 : i32
    return %arg0, %c0_i32 : i32, i32
  }
  func.func @transform_1(%arg0: i32) -> (i32, i32) {
    %c0_i32 = arith.constant 0 : i32
    %c0_i32_0 = arith.constant 0 : i32
    %c0_i32_1 = arith.constant 0 : i32
    return %c0_i32, %c0_i32_0 : i32, i32
  }
  func.func @transform_2(%arg0: i32) -> (i32, i32) {
    %c0_i32 = arith.constant 0 : i32
    %c0_i32_0 = arith.constant 0 : i32
    %c0_i32_1 = arith.constant 0 : i32
    return %c0_i32, %c0_i32_0 : i32, i32
  }
  func.func @transform_3(%arg0: i32) -> (i32, i32) {
    %c0_i32 = arith.constant 0 : i32
    %c0_i32_0 = arith.constant 0 : i32
    %c0_i32_1 = arith.constant 0 : i32
    return %c0_i32, %c0_i32_0 : i32, i32
  }
  func.func @transform_4(%arg0: i32) -> (i32, i32) {
    %c0_i32 = arith.constant 0 : i32
    %c0_i32_0 = arith.constant 0 : i32
    %c0_i32_1 = arith.constant 0 : i32
    return %c0_i32, %c0_i32_0 : i32, i32
  }
  func.func @transform_5(%arg0: i32) -> (i32, i32) {
    %c0_i32 = arith.constant 0 : i32
    %c0_i32_0 = arith.constant 0 : i32
    %c0_i32_1 = arith.constant 0 : i32
    return %c0_i32, %c0_i32_0 : i32, i32
  }
  func.func @transform_6(%arg0: i32) -> (i32, i32) {
    %c0_i32 = arith.constant 0 : i32
    %c0_i32_0 = arith.constant 0 : i32
    %c0_i32_1 = arith.constant 0 : i32
    return %c0_i32, %c0_i32_0 : i32, i32
  }
  func.func @transform_7(%arg0: i32) -> (i32, i32) {
    %c0_i32 = arith.constant 0 : i32
    %c0_i32_0 = arith.constant 0 : i32
    %c0_i32_1 = arith.constant 0 : i32
    return %c0_i32, %c0_i32_0 : i32, i32
  }
  func.func @transform_8(%arg0: i32) -> (i32, i32) {
    %c0_i32 = arith.constant 0 : i32
    %c0_i32_0 = arith.constant 0 : i32
    %c0_i32_1 = arith.constant 0 : i32
    return %c0_i32, %c0_i32_0 : i32, i32
  }
  func.func @transform_9(%arg0: i32) -> (i32, i32) {
    %c0_i32 = arith.constant 0 : i32
    %c0_i32_0 = arith.constant 0 : i32
    return %arg0, %c0_i32 : i32, i32
  }
}

</mosaic_0001>

<bundles_post_ra>
// kernel: baseline_mlp_forward.1
= control target key start
LH: loop header
LB: loop body
LE: loop exit
PB: predicated region body
PF: predicated region fallthrough
CT: control target
= control target key end

     0   :  { %14 = vsyncpa [#allocation3], 0  ;;  %s1098_s0 = inlined_call_operand.hbm [shape: f32[2,310], index: 0, kind: input, shape index: {}]   ;;  %s1099_s1 = inlined_call_operand.vmem [shape: bf16[310,128], index: 1, kind: input, shape index: {}]   ;;  %s1100_s2 = inlined_call_operand.vmem [shape: f32[1,128], index: 2, kind: input, shape index: {}]   ;;  %s1101_s3 = inlined_call_operand.vmem [shape: bf16[128,64], index: 3, kind: input, shape index: {}]   ;;  %s1102_s4 = inlined_call_operand.vmem [shape: f32[1,64], index: 4, kind: input, shape index: {}]   ;;  %s1103_s5 = inlined_call_operand.vmem [shape: bf16[64,32], index: 5, kind: input, shape index: {}]   ;;  %s1104_s6 = inlined_call_operand.vmem [shape: f32[1,32], index: 6, kind: input, shape index: {}]   ;;  %s1105_s7 = inlined_call_operand.vmem [shape: bf16[32,8], index: 7, kind: input, shape index: {}]   ;;  %s1106_s8 = inlined_call_operand.vmem [shape: f32[1,8], index: 8, kind: input, shape index: {}]   ;;  %s1107_s9 = inlined_call_operand.hbm [shape: f32[2,8], index: 9, kind: output, shape index: {}]  }
   0x1   :  { %15 = vsyncpa [#allocation4], 0 }
   0x2   :  { %20 = vsyncadd [#allocation3], 288  ;;  %s874_s30 = smov [#allocation2]   ;;  %s826_s13 = scalar_lea.hbm %s1098_s0, 96 }
   0x3   :  { %s21_s10 = sshll.u32 %s874_s30, 4  ;;  %p827_p0 = scmp.ne.s32.totalorder %s1098_s0, %s826_s13  ;;  %s22_s10 = int_to_ptr.vmem [resolvable:$true] %s21_s10 }
   0x4   :  { %p830_p1 = scmp.lt.u32.totalorder %s826_s13, %s1098_s0 }
   0x6   :  { %p832_p2 = pnand %p830_p1, %p827_p0 }
   0x8   :  { %835 = shalt.err (!%p832_p2)
}
   0x9   :  { %s836_s18 = scalar_lea.vmem %s22_s10, 96  ;;  %s840_s19 = scalar_lea.vmem %s22_s10, 384 }
   0xa   :  { %p837_p3 = scmp.ne.s32.totalorder %s22_s10, %s836_s18  ;;  %p841_p4 = scmp.lt.s32.totalorder %s22_s10, %s22_s10 }
   0xb   :  { %p842_p5 = scmp.lt.s32.totalorder %s840_s19, %s836_s18 }
   0xd   :  { %p843_p6 = por %p842_p5, %p841_p4 }
   0xf   :  { %p844_p7 = pnand %p843_p6, %p837_p3 }
  0x11   :  { %847 = shalt.err (!%p844_p7)
}
  0x12   :  { %s875_s20 = smov 96   ;;  %s876_s21 = smov 6  }
  0x13   :  { %27 = dma.hbm_to_vmem [thread:$0]  %s1098_s0, 96, %s22_s10, [#allocation3], %s875_s20, %s875_s20, %s876_s21  }
  0x14   :  { %870 = dma.done.wait [#allocation3], 384  }
  0x15   :  { %871 = vsyncadd [#allocation3], 4294966912  ;;  %v877_v0 = vmov 0.0   ;;  %vm878_vm0 = vmmov 0   ;;  %v786_v1 = vld [vmem:[%s1099_s1 + $0x40] sm:$0xff]   ;;  %v788_v3 = vld [vmem:[%s1099_s1 + $0x48] sm:$0xff]   ;;  %v63_v11 = vlaneseq }
  0x16   :  { %725 = vmatprep.subr.bf16.mxu1 %v877_v0  ;;  %733 = vmatprep.mubr.msk.bf16.mxu1 %vm878_vm0, %v877_v0  ;;  %v787_v2 = vld [vmem:[%s1099_s1] sm:$0xff]   ;;  %v789_v4 = vld [vmem:[%s1099_s1 + $0x8] sm:$0xff]   ;;  %v790_v5 = vld [vmem:[%s1099_s1 + $0x50] sm:$0xff]   ;;  %v879_v9 = vmov 1983009808   ;;  %vm264_vm1 = vcmask 1042432  }
  0x17   :  { %681 = vmatprep.subr.bf16.mxu0 %v786_v1  ;;  %v791_v6 = vld [vmem:[%s1099_s1 + $0x10] sm:$0xff]   ;;  %v792_v7 = vld [vmem:[%s1099_s1 + $0x58] sm:$0xff]   ;;  %v796_v8 = vld [vmem:[%s1099_s1 + $0x80] sm:$0xff]   ;;  %v61_v10 = vunpack.c.l.s4 %v879_v9  ;;  %v64_v17 = vshrl.u32 %v63_v11, 7  ;;  %vm260_vm2 = vcmask 441344   ;;  %vm506_vm5 = vcmask 523264  }
  0x18   :  { %682 = vmatpush3.bf16.msra.mxu0 %v787_v2  ;;  %v793_v12 = vld [vmem:[%s1099_s1 + $0x18] sm:$0xff]   ;;  %v794_v13 = vld [vmem:[%s1099_s1 + $0x60] sm:$0xff]   ;;  %726 = vmatpush3.bf16.msra.mxu1 %v796_v8  ;;  %v799_v14 = vld [vmem:[%s1099_s1 + $0x88] sm:$0xff]   ;;  %vm577_vm7 = vcmask 261120   ;;  %vm621_vm8 = vcmask 64512  }
  0x19   :  { %683 = vmatprep.subr.bf16.mxu0 %v788_v3  ;;  %727 = vmatprep.subr.bf16.mxu1 %v877_v0  ;;  %v795_v15 = vld [vmem:[%s1099_s1 + $0x20] sm:$0xff]   ;;  %v62_v16 = vunpack.c.0.s8 %v61_v10  ;;  %v797_v18 = vld [vmem:[%s1099_s1 + $0x68] sm:$0xff]   ;;  %v802_v19 = vld [vmem:[%s1099_s1 + $0x90] sm:$0xff]  }
  0x1a   :  { %v798_v20 = vld [vmem:[%s1099_s1 + $0x28] sm:$0xff]   ;;  %v800_v21 = vld [vmem:[%s1099_s1 + $0x70] sm:$0xff]   ;;  %v811_v30 = vld [vmem:[%s1099_s1 + $0x98] ss:$0 sps:$4 sm:$0x77]  }
  0x1b   :  { %v65_v22 = vsub.s32 %v62_v16, %v64_v17  ;;  %v805_v23 = vld [vmem:[#allocation2] ss:$6 sps:$4 sm:$0xff]   ;;  %v808_v24 = vld [vmem:[#allocation2 + $0xc] ss:$6 sps:$4 sm:$0xff]   ;;  %v803_v33 = vld [vmem:[%s1099_s1 + $0x78] sm:$0xff]   ;;  %v266_v35 = vsel %vm264_vm1, %v811_v30, 0 }
  0x1c   :  { %684 = vmatpush3.bf16.msra.mxu0 %v789_v4  ;;  %728 = vmatpush3.bf16.msra.mxu1 %v799_v14  ;;  %v807_v25 = vld [vmem:[#allocation2 + $0x4] ss:$6 sps:$4 sm:$0x33]   ;;  %v810_v26 = vld [vmem:[#allocation2 + $0x10] ss:$6 sps:$4 sm:$0x33]  }
  0x1d   :  { %685 = vmatprep.subr.bf16.mxu0 %v790_v5  ;;  %729 = vmatprep.subr.bf16.mxu1 %v877_v0  ;;  %v801_v27 = vld [vmem:[%s1099_s1 + $0x30] sm:$0xff]   ;;  %v66_v28 = vrot.slane %v805_v23, %v65_v22  ;;  %v80_v29 = vrot.slane %v808_v24, %v65_v22  ;;  %v73_v31 = vrot.slane %v807_v25, %v65_v22  ;;  %v812_v39 = vld [vmem:[%s1101_s3] sm:$0xff]   ;;  %v804_v40 = vld [vmem:[%s1099_s1 + $0x38] sm:$0xff]  }
  0x1e   :  { %v87_v32 = vrot.slane %v810_v26, %v65_v22  ;;  %v813_v42 = vld [vmem:[%s1101_s3 + $0x8] sm:$0xff]   ;;  %v814_v44 = vld [vmem:[%s1101_s3 + $0x10] sm:$0xff]   ;;  %v815_v45 = vld [vmem:[%s1101_s3 + $0x18] sm:$0xff]  }
  0x1f   :  { %v89_v34 = vcombine.high %v66_v28, %v80_v29  ;;  %v88_v38 = vcombine.low %v66_v28, %v80_v29  ;;  %v816_v46 = vld [vmem:[%s1101_s3 + $0x20] sm:$0xff]   ;;  %v817_v47 = vld [vmem:[%s1101_s3 + $0x28] sm:$0xff]   ;;  %v818_v48 = vld [vmem:[%s1101_s3 + $0x30] sm:$0xff]  }
  0x20   :  { %686 = vmatpush3.bf16.msra.mxu0 %v791_v6  ;;  %730 = vmatpush3.bf16.msra.mxu1 %v802_v19  ;;  %v90_v36 = vcombine.low %v73_v31, %v87_v32  ;;  %v819_v49 = vld [vmem:[%s1101_s3 + $0x38] sm:$0xff]   ;;  %v820_v50 = vld [vmem:[%s1103_s5] sm:$0xff]   ;;  %v821_v51 = vld [vmem:[%s1103_s5 + $0x8] sm:$0xff]  }
  0x21   :  { %687 = vmatprep.subr.bf16.mxu0 %v792_v7  ;;  %731 = vmatprep.subr.bf16.mxu1 %v877_v0  ;;  %v95_v37 = vpack.c.bf16 %v89_v34, %v89_v34  ;;  %v94_v43 = vpack.c.bf16 %v88_v38, %v88_v38  ;;  %v640_v58 = vld [vmem:[%s1100_s2] ss:$0 sm:$0xff]  ;;  %v822_v4 = vld [vmem:[%s1103_s5 + $0x10] sm:$0xff]   ;;  %v823_v5 = vld [vmem:[%s1103_s5 + $0x18] sm:$0xff]  }
  0x22   :  { %v96_v41 = vpack.c.bf16 %v90_v36, %v90_v36  ;;  %v662_v6 = vld [vmem:[%s1102_s4] ss:$0 sm:$0xff]  ;;  %v825_v16 = vld [vmem:[%s1105_s7 + $0x8] sm:$0xff]  }
  0x23   :  { %300 = vmatprep.mubr.bf16.mxu0 %v95_v37  ;;  %v671_v17 = vld [vmem:[%s1104_s6] ss:$0 sm:$0xff] }
  0x24   :  { %688 = vmatpush3.bf16.msra.mxu0 %v793_v12  ;;  %732 = vmatpush3.bf16.msra.mxu1 %v266_v35 }
  0x25   :  { %689 = vmatprep.subr.bf16.mxu0 %v794_v13  ;;  %737 = vmatprep.subr.bf16.mxu1 %v877_v0 }
  0x27   :  { %734 = vmatmul.mubr.msk.bf16.vlgmr.msra.gmra.mrb[0].mxu1 %vm260_vm2, %v96_v41 }
  0x28   :  { %690 = vmatpush3.bf16.msra.mxu0 %v795_v15  ;;  %738 = vmatpush3.bf16.msra.mxu1 %v812_v39  ;;  %v824_v15 = vld [vmem:[%s1105_s7] sm:$0xff]  }
  0x29   :  { %691 = vmatprep.subr.bf16.mxu0 %v797_v18  ;;  %753 = vmatprep.mubr.msk.bf16.mxu1 %vm878_vm0, %v877_v0 }
  0x2a   :  { %739 = vmatprep.subr.bf16.mxu1 %v877_v0 }
  0x2c   :  { %692 = vmatpush3.bf16.msra.mxu0 %v798_v20  ;;  %740 = vmatpush3.bf16.msra.mxu1 %v813_v42 }
  0x2d   :  { %693 = vmatprep.subr.bf16.mxu0 %v800_v21  ;;  %741 = vmatprep.subr.bf16.mxu1 %v877_v0 }
  0x30   :  { %694 = vmatpush3.bf16.msra.mxu0 %v801_v27  ;;  %742 = vmatpush3.bf16.msra.mxu1 %v814_v44 }
  0x31   :  { %695 = vmatprep.subr.bf16.mxu0 %v803_v33  ;;  %743 = vmatprep.subr.bf16.mxu1 %v877_v0 }
  0x34   :  { %696 = vmatpush3.bf16.msra.mxu0 %v804_v40  ;;  %744 = vmatpush3.bf16.msra.mxu1 %v815_v45 }
  0x35   :  { %757 = vmatprep.subr.bf16.mxu0 %v877_v0  ;;  %745 = vmatprep.subr.bf16.mxu1 %v877_v0 }
  0x37   :  { %301 = vmatmul.mubr.bf16.vlgmr.msra.gmra.mrb[0].mxu0 %v94_v43 }
  0x38   :  { %765 = vmatprep.mubr.msk.bf16.mxu0 %vm878_vm0, %v877_v0  ;;  %746 = vmatpush3.bf16.msra.mxu1 %v816_v46 }
  0x39   :  { %747 = vmatprep.subr.bf16.mxu1 %v877_v0  ;;  %758 = vmatpush3.bf16.msra.mxu0 %v820_v50 }
  0x3a   :  { %759 = vmatprep.subr.bf16.mxu0 %v877_v0 }
  0x3c   :  { %748 = vmatpush3.bf16.msra.mxu1 %v817_v47 }
  0x3d   :  { %749 = vmatprep.subr.bf16.mxu1 %v877_v0  ;;  %760 = vmatpush3.bf16.msra.mxu0 %v821_v51 }
  0x3e   :  { %761 = vmatprep.subr.bf16.mxu0 %v877_v0 }
  0x40   :  { %750 = vmatpush3.bf16.msra.mxu1 %v818_v48 }
  0x41   :  { %751 = vmatprep.subr.bf16.mxu1 %v877_v0  ;;  %762 = vmatpush3.bf16.msra.mxu0 %v822_v4 }
  0x42   :  { %763 = vmatprep.subr.bf16.mxu0 %v877_v0 }
  0x44   :  { %752 = vmatpush3.bf16.msra.mxu1 %v819_v49 }
  0x45   :  { %764 = vmatpush3.bf16.msra.mxu0 %v823_v5 }
  0x46   :  { %769 = vmatprep.subr.bf16.mxu0 %v877_v0 }
  0xfa   :  { %v342_v52 = vpop.f32.mrb[0].mxu1 }
  0xfb   :  { %v735_v53 = vpop.f32.mrb[1].mxu1 }
  0xfc   :  { %v345_v54 = vpop.f32.mrb[2].mxu1 }
  0xfd   :  { %v736_v55 = vpop.f32.mrb[3].mxu1 }
 0x10a   :  { %v697_v56 = vpop.f32.mrb[0].mxu0 }
 0x10b   :  { %v698_v57 = vpop.f32.mrb[1].mxu0 }
 0x10c   :  { %v699_v59 = vadd.f32 %v698_v57, %v697_v56  ;;  %v700_v60 = vpop.f32.mrb[2].mxu0 }
 0x10d   :  { %v701_v61 = vpop.f32.mrb[3].mxu0 }
 0x10e   :  { %v303_v62 = vadd.f32 %v699_v59, %v640_v58 }
 0x110   :  { %v343_v63 = vadd.f32 %v342_v52, %v303_v62 }
 0x112   :  { %vm348_vm3 = vcmp.gt.f32.partialorder %v343_v63, 0.0  ;;  %v349_v1 = vmul.f32 0.01, %v343_v63 }
 0x114   :  { %v350_v2 = vsel %vm348_vm3, %v343_v63, %v349_v1 }
 0x115   :  { %v351_v3 = vpack.c.bf16 %v350_v2, %v350_v2 }
 0x117   :  { %754 = vmatmul.mubr.bf16.vlgmr.msra.gmra.mrb[4].mxu1 %v351_v3 }
 0x1ea   :  { %v457_v7 = vpop.f32.mrb[4].mxu1 }
 0x1eb   :  { %v458_v8 = vadd.f32 %v662_v6, %v457_v7  ;;  %v755_v9 = vpop.f32.mrb[5].mxu1 }
 0x1ec   :  { %v460_v10 = vpop.f32.mrb[6].mxu1 }
 0x1ed   :  { %vm463_vm4 = vcmp.gt.f32.partialorder %v458_v8, 0.0  ;;  %v464_v11 = vmul.f32 0.01, %v458_v8  ;;  %v756_v12 = vpop.f32.mrb[7].mxu1 }
 0x1ef   :  { %v465_v13 = vsel %vm463_vm4, %v458_v8, %v464_v11 }
 0x1f0   :  { %v466_v14 = vpack.c.bf16 %v465_v13, %v465_v13 }
 0x1f2   :  { %766 = vmatmul.mubr.msk.bf16.vlgmr.msra.gmra.mrb[4].mxu0 %vm506_vm5, %v466_v14 }
 0x1f3   :  { %773 = vmatprep.mubr.msk.bf16.mxu0 %vm878_vm0, %v877_v0  ;;  %770 = vmatpush3.bf16.msra.mxu0 %v824_v15 }
 0x1f4   :  { %771 = vmatprep.subr.bf16.mxu0 %v877_v0  ;;  %v677_v0 = vld [vmem:[%s1106_s8] ss:$0 sm:$0xff] }
 0x1f7   :  { %772 = vmatpush3.bf16.msra.mxu0 %v825_v16 }
 0x2c5   :  { %v544_v18 = vpop.f32.mrb[4].mxu0 }
 0x2c6   :  { %v545_v19 = vadd.f32 %v671_v17, %v544_v18  ;;  %v767_v20 = vpop.f32.mrb[5].mxu0 }
 0x2c7   :  { %v547_v21 = vpop.f32.mrb[6].mxu0 }
 0x2c8   :  { %vm550_vm6 = vcmp.gt.f32.partialorder %v545_v19, 0.0  ;;  %v551_v22 = vmul.f32 0.01, %v545_v19  ;;  %v768_v23 = vpop.f32.mrb[7].mxu0 }
 0x2ca   :  { %v552_v24 = vsel %vm550_vm6, %v545_v19, %v551_v22 }
 0x2cb   :  { %v553_v25 = vpack.c.bf16 %v552_v24, %v552_v24 }
 0x2cd   :  { %774 = vmatmul.mubr.msk.bf16.vlgmr.msra.gmra.mrb[8].mxu0 %vm577_vm7, %v553_v25 }
 0x3a0   :  { %v615_v26 = vpop.f32.mrb[8].mxu0 }
 0x3a1   :  { %v616_v27 = vadd.f32 %v677_v0, %v615_v26  ;;  %v775_v28 = vpop.f32.mrb[9].mxu0 }
 0x3a2   :  { %v618_v29 = vpop.f32.mrb[10].mxu0 }
 0x3a3   :  { %622 = vst.msk [vmem:[#allocation5] sm:$0xff] %vm621_vm8, %v616_v27  ;;  %v776_v30 = vpop.f32.mrb[11].mxu0 }
 0x3a4   :  { %627 = vsyncadd [#allocation4], 96  ;;  %s880_s6 = smov [#allocation5]  }
 0x3a5   :  { %s628_s7 = sshll.u32 %s880_s6, 4  ;;  %s629_s7 = int_to_ptr.vmem [resolvable:$true] %s628_s7 }
 0x3a6   :  { %s848_s28 = scalar_lea.vmem %s629_s7, 32  ;;  %s852_s0 = scalar_lea.vmem %s629_s7, 128 }
 0x3a7   :  { %p849_p8 = scmp.ne.s32.totalorder %s629_s7, %s848_s28  ;;  %p853_p9 = scmp.lt.s32.totalorder %s629_s7, %s629_s7 }
 0x3a8   :  { %p854_p10 = scmp.lt.s32.totalorder %s852_s0, %s848_s28 }
 0x3aa   :  { %p855_p11 = por %p854_p10, %p853_p9 }
 0x3ac   :  { %p856_p12 = pnand %p855_p11, %p849_p8 }
 0x3ae   :  { %859 = shalt.err (!%p856_p12)
}
 0x3af   :  { %s860_s30 = scalar_lea.hbm %s1107_s9, 32 }
 0x3b0   :  { %p861_p13 = scmp.ne.s32.totalorder %s1107_s9, %s860_s30  ;;  %p864_p0 = scmp.lt.u32.totalorder %s860_s30, %s1107_s9 }
 0x3b2   :  { %p866_p1 = pnand %p864_p0, %p861_p13 }
 0x3b4   :  { %869 = shalt.err (!%p866_p1)
}
 0x3b5   :  { %s881_s14 = smov 32   ;;  %s882_s15 = smov 2  }
 0x3b6   :  { %634 = dma.vmem_to_hbm [thread:$0]  %s629_s7, 32, %s1107_s9, [#allocation4], %s881_s14, %s881_s14, %s882_s15  }
 0x3b7   :  { %872 = dma.done.wait [#allocation4], 128  }
 0x3b8   :  { %873 = vsyncadd [#allocation4], 4294967168 }
 0x3b9   :  { %638 = vsyncpa [#allocation3], 1 }
 0x3ba   :  { %639 = vsyncpa [#allocation4], 1 }

</bundles_post_ra>
